<compile_context>
chip_gen: v7x
topology: tpu7x:2x2x1
jax: 0.10.0
libtpu: 0.0.40
codegen_flags: <defaults>
</compile_context>

<pallas_src>
import jax
import jax.numpy as jnp
from jax.experimental import pallas as pl
from jax.experimental.pallas import tpu as pltpu

_LANE = 128      # vreg lane width  -> last-dim alignment
_SUBLANE = 8     # vreg sublane     -> second-to-last-dim alignment


def _round_up(x, m):
    return ((x + m - 1) // m) * m


def toy_linear_kernel(x_ref, w1t_ref, w2t_ref, o_ref, acc_ref):
    # x_ref   : (TB, IN_P)   batch tile of the (padded) input
    # w1t_ref : (IN_P, TK)   column tile of linear1.weight.T
    # w2t_ref : (TK, IN_P)   row tile of linear2.weight.T
    # o_ref   : (TB, IN_P)   output tile (written once, on the last k step)
    # acc_ref : (TB, IN_P)   f32 accumulator scratch (persists across k steps)
    k = pl.program_id(1)

    @pl.when(k == 0)
    def _init():
        acc_ref[...] = jnp.zeros_like(acc_ref)

    # First matmul: (TB, IN_P) @ (IN_P, TK) -> f32 slab of h for this k-chunk.
    h = jnp.dot(x_ref[...], w1t_ref[...], preferred_element_type=jnp.float32)
    # Second matmul: accumulate this chunk's contribution to y in f32.
    # (h is fed back in the compute dtype; accumulation stays f32.)
    acc_ref[...] += jnp.dot(h.astype(x_ref.dtype), w2t_ref[...],
                            preferred_element_type=jnp.float32)

    @pl.when(k == pl.num_programs(1) - 1)
    def _finalize():
        o_ref[...] = acc_ref[...].astype(o_ref.dtype)


def toy_linear_model(x, w1, w2, *, tb=None, tk=None, compute_dtype=None):
    """Forward of ToyLinearModel.

    x  : (B, in_features)
    w1 : (out_features, in_features)  -- linear1.weight (PyTorch layout)
    w2 : (in_features, out_features)  -- linear2.weight (PyTorch layout)
    returns (B, in_features), same dtype as x.
    """
    B, in_features = x.shape
    out_features = w1.shape[0]
    assert w1.shape == (out_features, in_features)
    assert w2.shape == (in_features, out_features)

    out_dtype = x.dtype
    if compute_dtype is None:
        compute_dtype = x.dtype

    # --- lane-dense padding of the feature dims ------------------------------
    in_p = _round_up(in_features, _LANE)
    out_p = _round_up(out_features, _LANE)

    # Hidden-dim (reduction) tile.
    if tk is None:
        tk = min(out_p, 512)
    assert tk % _LANE == 0, "tk must be a multiple of 128"
    out_p = _round_up(out_p, tk)

    # Batch tile: multiple of 8; 512-1024 rows is the sweet spot at real sizes.
    if tb is None:
        tb = min(_round_up(B, _SUBLANE), 512)
    assert tb % _SUBLANE == 0, "tb must be a multiple of 8"
    b_p = _round_up(B, tb)

    # --- glue: pad + pre-transpose weights to row-major matmul operands ------
    cdt = jnp.dtype(compute_dtype)
    x_p = jnp.zeros((b_p, in_p), cdt).at[:B, :in_features].set(
        x.astype(cdt))
    w1t = jnp.zeros((in_p, out_p), cdt).at[:in_features, :out_features].set(
        w1.T.astype(cdt))
    w2t = jnp.zeros((out_p, in_p), cdt).at[:out_features, :in_features].set(
        w2.T.astype(cdt))

    grid = (b_p // tb, out_p // tk)  # (batch: parallel, hidden: reduction)

    # --- VMEM budget + scheduler cost hint ------------------------------------
    csz = cdt.itemsize
    osz = jnp.dtype(out_dtype).itemsize
    vmem_bytes = (2 * (tb * in_p * csz            # x tile (double buffered)
                       + in_p * tk * csz          # w1t tile
                       + tk * in_p * csz          # w2t tile
                       + tb * in_p * osz)         # output tile
                  + tb * in_p * 4)                # f32 accumulator
    vmem_limit = int(min(max(2 * vmem_bytes, 32 << 20), 128 << 20))

    cost = pl.CostEstimate(
        flops=4 * b_p * in_p * out_p,  # 2 matmuls x 2*M*N*K
        transcendentals=0,
        bytes_accessed=(b_p * in_p * csz + in_p * out_p * csz
                        + out_p * in_p * csz + b_p * in_p * osz))

    # TODO(synk): on v7x, single-buffering the k-invariant x tile via
    # pipeline_mode=pl.Buffered(1) would shave a little more VMEM.
    y_p = pl.pallas_call(
        toy_linear_kernel,
        out_shape=jax.ShapeDtypeStruct((b_p, in_p), out_dtype),
        grid_spec=pltpu.PrefetchScalarGridSpec(
            num_scalar_prefetch=0,
            grid=grid,
            in_specs=[
                pl.BlockSpec((tb, in_p), lambda i, k: (i, 0)),   # x
                pl.BlockSpec((in_p, tk), lambda i, k: (0, k)),   # W1^T cols
                pl.BlockSpec((tk, in_p), lambda i, k: (k, 0)),   # W2^T rows
            ],
            out_specs=pl.BlockSpec((tb, in_p), lambda i, k: (i, 0)),
            scratch_shapes=[pltpu.VMEM((tb, in_p), jnp.float32)],
        ),
        compiler_params=pltpu.CompilerParams(
            dimension_semantics=("parallel", "arbitrary"),
            vmem_limit_bytes=vmem_limit),
        cost_estimate=cost,
    )(x_p, w1t, w2t)

    return y_p[:B, :in_features]


if __name__ == "__main__":
    # Small shapes consistent with ToyLinearModel(in_features, out_features),
    # chosen non-multiples of 128 to exercise the padding path, and tb/tk so
    # the grid is (2, 2): batch axis pipelines/megacore-shards, hidden axis
    # exercises the accumulator reduction.
    batch = 64
    in_features = 96
    out_features = 200

    key = jax.random.PRNGKey(0)
    kx, k1, k2 = jax.random.split(key, 3)

    x = jax.random.normal(kx, (batch, in_features), dtype=jnp.float32)
    # Deterministic bias-free Linear weights, PyTorch (out, in) layout.
    w1 = jax.random.normal(k1, (out_features, in_features), dtype=jnp.float32) * 0.05
    w2 = jax.random.normal(k2, (in_features, out_features), dtype=jnp.float32) * 0.05

    ref = jnp.dot(jnp.dot(x, w1.T, precision="highest"), w2.T, precision="highest")

    # f32 compute path.
    out = toy_linear_model(x, w1, w2, tb=32, tk=128)
    out = jax.block_until_ready(out)
    assert out.shape == (batch, in_features)
    assert jnp.allclose(out, ref, atol=1e-2, rtol=1e-2), "f32 mismatch vs reference"

    # bf16 MXU compute path (what you'd use at production sizes) — looser tol.
    out_bf16 = toy_linear_model(x, w1, w2, tb=32, tk=128,
                                compute_dtype=jnp.bfloat16)
    out_bf16 = jax.block_until_ready(out_bf16)
    assert out_bf16.shape == (batch, in_features)
    assert jnp.allclose(out_bf16, ref, atol=1e-1, rtol=1e-1), "bf16 mismatch vs reference"

    print("KERNEL_OK")
</pallas_src>

<mosaic_0001>
module attributes {stable_mosaic.version = 11 : i64} {
  func.func @toy_linear_kernel(%arg0: i32, %arg1: i32, %arg2: memref<32x128xf32, #tpu.memory_space<vmem>>, %arg3: memref<128x128xf32, #tpu.memory_space<vmem>>, %arg4: memref<128x128xf32, #tpu.memory_space<vmem>>, %arg5: memref<32x128xf32, #tpu.memory_space<vmem>>, %arg6: memref<32x128xf32, #tpu.memory_space<vmem>>) attributes {dimension_semantics = [#tpu.dimension_semantics<parallel>, #tpu.dimension_semantics<arbitrary>], iteration_bounds = array<i64: 2, 2>, scalar_prefetch = 0 : i64, scratch_operands = 1 : i64, tpu.core_type = #tpu.core_type<tc>, window_params = [{transform_indices = @transform_0, window_bounds = array<i64: 32, 128>}, {transform_indices = @transform_1, window_bounds = array<i64: 128, 128>}, {transform_indices = @transform_2, window_bounds = array<i64: 128, 128>}, {transform_indices = @transform_3, window_bounds = array<i64: 32, 128>}]} {
    %c0_i32 = arith.constant 0 : i32
    %0 = arith.cmpi eq, %arg1, %c0_i32 : i32
    %1 = arith.extui %0 : i1 to i32
    %c0_i32_0 = arith.constant 0 : i32
    %2 = arith.cmpi ne, %1, %c0_i32_0 : i32
    scf.if %2 {
      %cst_12 = arith.constant 0.000000e+00 : f32
      %14 = vector.broadcast %cst_12 : f32 to vector<32x128xf32>
      %c0_13 = arith.constant 0 : index
      %c0_14 = arith.constant 0 : index
      %15 = vector.load %arg6[%c0_13, %c0_14] : memref<32x128xf32, #tpu.memory_space<vmem>>, vector<32x128xf32>
      tpu.vector_store %arg6[%c0_13, %c0_14], %14 {strides = array<i32>} : memref<32x128xf32, #tpu.memory_space<vmem>>, vector<32x128xf32>,
    } else {
    }
    %c0 = arith.constant 0 : index
    %c0_1 = arith.constant 0 : index
    %3 = vector.load %arg2[%c0, %c0_1] : memref<32x128xf32, #tpu.memory_space<vmem>>, vector<32x128xf32>
    %c0_2 = arith.constant 0 : index
    %c0_3 = arith.constant 0 : index
    %4 = vector.load %arg3[%c0_2, %c0_3] : memref<128x128xf32, #tpu.memory_space<vmem>>, vector<128x128xf32>
    %cst = arith.constant dense<0.000000e+00> : vector<32x128xf32>
    %5 = tpu.matmul %3, %4, %cst {dimension_numbers = #tpu.dot_dimension_numbers<[1], [0], [0], [1], [0, 0, 1, 1], [], []>} : vector<32x128xf32>, vector<128x128xf32>, vector<32x128xf32> -> vector<32x128xf32>
    %c0_4 = arith.constant 0 : index
    %c0_5 = arith.constant 0 : index
    %6 = vector.load %arg6[%c0_4, %c0_5] : memref<32x128xf32, #tpu.memory_space<vmem>>, vector<32x128xf32>
    %c0_6 = arith.constant 0 : index
    %c0_7 = arith.constant 0 : index
    %7 = vector.load %arg4[%c0_6, %c0_7] : memref<128x128xf32, #tpu.memory_space<vmem>>, vector<128x128xf32>
    %cst_8 = arith.constant dense<0.000000e+00> : vector<32x128xf32>
    %8 = tpu.matmul %5, %7, %cst_8 {dimension_numbers = #tpu.dot_dimension_numbers<[1], [0], [0], [1], [0, 0, 1, 1], [], []>} : vector<32x128xf32>, vector<128x128xf32>, vector<32x128xf32> -> vector<32x128xf32>
    %9 = arith.addf %6, %8 : vector<32x128xf32>
    %c0_9 = arith.constant 0 : index
    %c0_10 = arith.constant 0 : index
    %10 = vector.load %arg6[%c0_9, %c0_10] : memref<32x128xf32, #tpu.memory_space<vmem>>, vector<32x128xf32>
    tpu.vector_store %arg6[%c0_9, %c0_10], %9 {strides = array<i32>} : memref<32x128xf32, #tpu.memory_space<vmem>>, vector<32x128xf32>,
    %c1_i32 = arith.constant 1 : i32
    %11 = arith.cmpi eq, %arg1, %c1_i32 : i32
    %12 = arith.extui %11 : i1 to i32
    %c0_i32_11 = arith.constant 0 : i32
    %13 = arith.cmpi ne, %12, %c0_i32_11 : i32
    scf.if %13 {
      %c0_12 = arith.constant 0 : index
      %c0_13 = arith.constant 0 : index
      %14 = vector.load %arg6[%c0_12, %c0_13] : memref<32x128xf32, #tpu.memory_space<vmem>>, vector<32x128xf32>
      %c0_14 = arith.constant 0 : index
      %c0_15 = arith.constant 0 : index
      %15 = vector.load %arg5[%c0_14, %c0_15] : memref<32x128xf32, #tpu.memory_space<vmem>>, vector<32x128xf32>
      tpu.vector_store %arg5[%c0_14, %c0_15], %14 {strides = array<i32>} : memref<32x128xf32, #tpu.memory_space<vmem>>, vector<32x128xf32>,
    } else {
    }
    return
  }
  func.func @transform_0(%arg0: i32, %arg1: i32) -> (i32, i32) {
    %c0_i32 = arith.constant 0 : i32
    %c0_i32_0 = arith.constant 0 : i32
    return %arg0, %c0_i32 : i32, i32
  }
  func.func @transform_1(%arg0: i32, %arg1: i32) -> (i32, i32) {
    %c0_i32 = arith.constant 0 : i32
    %c0_i32_0 = arith.constant 0 : i32
    return %c0_i32, %arg1 : i32, i32
  }
  func.func @transform_2(%arg0: i32, %arg1: i32) -> (i32, i32) {
    %c0_i32 = arith.constant 0 : i32
    %c0_i32_0 = arith.constant 0 : i32
    return %arg1, %c0_i32 : i32, i32
  }
  func.func @transform_3(%arg0: i32, %arg1: i32) -> (i32, i32) {
    %c0_i32 = arith.constant 0 : i32
    %c0_i32_0 = arith.constant 0 : i32
    return %arg0, %c0_i32 : i32, i32
  }
}

</mosaic_0001>

<bundles_post_ra>
// kernel: tpu_custom_call.1
= control target key start
LH: loop header
LB: loop body
LE: loop exit
PB: predicated region body
PF: predicated region fallthrough
CT: control target
= control target key end

     0   :  { %s1641_s0 = inlined_call_operand.hbm [shape: f32[64,128], index: 0, kind: input, shape index: {}]   ;;  %s1642_s1 = inlined_call_operand.hbm [shape: f32[128,256], index: 1, kind: input, shape index: {}]   ;;  %s1643_s2 = inlined_call_operand.hbm [shape: f32[256,128], index: 2, kind: input, shape index: {}]   ;;  %s1644_s3 = inlined_call_operand.hbm [shape: f32[64,128], index: 3, kind: output, shape index: {}]  }
   0x1   :  { %1661 = sst [smem:[#allocation20_spill]] %s1642_s1 }
   0x2   :  { %1662 = sst [smem:[#allocation21_spill]] %s1644_s3 }
   0x3   :  { %8 = vsyncpa [#allocation4], 0 }
   0x4   :  { %10 = vsyncpa [#allocation4 + $0x1], 0 }
   0x5   :  { %11 = vsyncpa [#allocation7], 0 }
   0x6   :  { %13 = vsyncpa [#allocation7 + $0x1], 0 }
   0x7   :  { %14 = vsyncpa [#allocation5], 0 }
   0x8   :  { %16 = vsyncpa [#allocation5 + $0x1], 0  ;;  %s1232_s12 = smov 0   ;;  %s1234_s13 = smov 0  }
   0x9   :  { %s1236_s14 = smov 0   ;;  %s1238_s15 = smov 0  }
   0xa   :  { %s1240_s16 = smov 0   ;;  %s1242_s17 = smov 0  }
   0xb   :  { %s1244_s18 = smov 0   ;;  %s1246_s19 = smov 0  }
   0xc   :  { %s1248_s20 = smov 0   ;;  %s1250_s21 = smov 0  }
   0xd   :  { %s1252_s22 = smov 0  }
   0xe LB: > { %1663 = sst [smem:[#allocation13_spill]] %s1168_s14  ;;  %s31_s23 = sadd.s32 1, %s1192_s20  ;;  %s1200_s22 = sphi %s1252_s22, %s22_s22   ;;  %s1196_s21 = sphi %s1250_s21, %s1700_s21   ;;  %s1192_s20 = sphi %s1248_s20, %s1706_s20   ;;  %s1188_s19 = sphi %s1246_s19, %s1698_s19   ;;  %s1184_s18 = sphi %s1244_s18, %s1705_s18   ;;  %s1180_s17 = sphi %s1242_s17, %s1697_s17   ;;  %s1176_s16 = sphi %s1240_s16, %s1704_s16   ;;  %s1172_s15 = sphi %s1238_s15, %s1703_s15   ;;  %s1168_s14 = sphi %s1236_s14, %s1695_s14   ;;  %s1164_s13 = sphi %s1234_s13, %s1702_s13   ;;  %s1160_s12 = sphi %s1232_s12, %s1701_s12  }
   0xf   : > { %1664 = sst [smem:[#allocation14_spill]] %s1180_s17  ;;  %p1646_p0 = scmp.eq.s32.totalorder %s1200_s22, 0 }
  0x10   : > { %1665 = sst [smem:[#allocation15_spill]] %s1196_s21  ;;  %p1289_p1 = scmp.ge.s32.totalorder %s31_s23, 2 }
  0x11   : > { %s67_s25 = sadd.s32 1, %s1168_s14  ;;  %p74_p2 = scmp.ne.s32.totalorder %s1168_s14, %s1164_s13 }
  0x12   : > { %s1708_s23 = smov (%p1289_p1, %s31_s23), 0  ;;  %p1645_p5 = scmp.lt.s32.totalorder %s1200_s22, 4 }
  0x13   : > { %1667 = sst [smem:[#allocation16_spill]] %s1708_s23  ;;  %p76_p4 = por %p74_p2, %p1646_p0 }
  0x14   : > { %s64_s26 = ssub.s32 %s1192_s20, %s1708_s23  ;;  %s177_s27 = sand.u32 1, %s1200_s22  }
  0x15   : > { %p65_p6 = scmp.eq.s32.totalorder %s64_s26, 0  ;;  %s179_s29 = sand.u32 1, %s1168_s14  }
  0x16   : > { %s1312_s30 = sshll.u32 %s179_s29, 7  ;;  %s667_s4 = sshll.u32 %s1192_s20, 7 }
  0x17   : > { %s1309_s28 = scalar_select %p65_p6, %s1168_s14, %s67_s25  }
  0x18   : > { %s1669_s1 = sld [smem:[#allocation20_spill]]  ;;  %s181_s8 = scalar_lea.vmem [#allocation6], %s1312_s30 }
  0x19   : > { %1668 = sst [smem:[#allocation17_spill]] %s1309_s28  ;;  %s187_s9 = sshll.u32 %s181_s8, 4  ;;  %s1327_s9 = int_to_ptr.vmem [resolvable:$true] %s187_s9 }
  0x1a   : > { %p1323_p7 = pnand %p1645_p5, %p76_p4  ;;  %s1330_s11 = scalar_lea.sflag [#allocation7], %s177_s27 }
  0x1c   : > { %p1649_p10 = pneg %p1323_p7 }
  0x1e   : > { %s1318_s7 = scalar_lea.hbm %s1669_s1, %s667_s4  ;;  %s989_s4 = scalar_lea.hbm %s1669_s1, 4096 }
  0x1f   : > { %s984_s25 = scalar_lea.hbm %s1318_s7, 2048  ;;  %p990_p13 = scmp.lt.u32.totalorder %s1318_s7, %s1669_s1 }
  0x20   : > { %p985_p9 = scmp.ne.s32.totalorder %s1318_s7, %s984_s25  ;;  %p991_p2 = scmp.lt.u32.totalorder %s989_s4, %s984_s25 }
  0x21   : > { %p993_p6 = scmp.lt.u32.totalorder %s984_s25, %s1318_s7 }
  0x22   : > { %p987_p11 = pnand %p1649_p10, %p985_p9  ;;  %p992_p4 = por %p991_p2, %p990_p13 }
  0x24   : > { %p988_p12 = pneg %p987_p11  ;;  %p994_p5 = por %p993_p6, %p992_p4 }
  0x26   : > { %p995_p3 = pnand %p994_p5, %p988_p12 }
  0x28   : > { %998 = shalt.err (!%p995_p3)
}
  0x29   : > { %s999_s27 = scalar_lea.vmem %s1327_s9, 2048  ;;  %s1202_s8 = smov [#allocation6]  }
  0x2a   : > { %p1000_p9 = scmp.ne.s32.totalorder %s1327_s9, %s999_s27  ;;  %s1004_s26 = sshll.u32 %s1202_s8, 4  ;;  %s1005_s26 = int_to_ptr.vmem [resolvable:$false] %s1004_s26 }
  0x2b   : > { %s1006_s29 = scalar_lea.vmem %s1005_s26, 4096  ;;  %p1007_p8 = scmp.lt.s32.totalorder %s1327_s9, %s1005_s26 }
  0x2c   : > { %p1002_p11 = pnand %p1000_p9, %p1649_p10  ;;  %p1008_p13 = scmp.lt.s32.totalorder %s1006_s29, %s999_s27 }
  0x2e   : > { %p1003_p0 = pneg %p1002_p11  ;;  %p1009_p2 = por %p1008_p13, %p1007_p8 }
  0x30   : > { %p1010_p4 = pnand %p1009_p2, %p1003_p0 }
  0x32   : > { %1013 = shalt.err (!%p1010_p4)
}
  0x33   : > { %s1203_s25 = smov 256   ;;  %s1647_s4 = smov 128  }
  0x34   : > { %s1650_s5 = smov 8   ;;  %p216_p0 = scmp.lt.s32.totalorder %s1200_s22, 5 }
  0x35   : > { %880 = dma.hbm_to_vmem [thread:$0]  (!%p1323_p7), %s1318_s7, 2048, %s1327_s9, %s1330_s11, %s1203_s25, %s1647_s4, %s1650_s5  }
  0x36   : > { %p1671_p3 = scmp.ge.s32.totalorder %s1200_s22, 1  ;;  %s1368_s27 = sadd.s32 4294967295, %s1200_s22  }
  0x37   : > { %s660_s8 = sadd.s32 4294967294, %s1200_s22   ;;  %s34_s26 = sadd.s32 1, %s1196_s21 }
  0x38   : > { %p1363_p5 = pnand %p1671_p3, %p216_p0  ;;  %s41_s29 = sadd.s32 1, %s1180_s17 }
  0x39   : > { %s1710_s26 = smov (!%p1289_p1, %s34_s26), %s1196_s21  ;;  %p48_p8 = scmp.ne.s32.totalorder %s1180_s17, %s1176_s16 }
  0x3a   : > { %s1672_s6 = scalar_select %p1363_p5, 1, 0 }
  0x3b   : > { %p54_p12 = scmp.ne.s32.totalorder %s1176_s16, %s1172_s15  ;;  %p36_p6 = scmp.ge.s32.totalorder %s1710_s26, 2 }
  0x3c   : > { %p55_p9 = scmp.eq.s32.totalorder %s1368_s27, 0  ;;  %p1673_p11 = scmp.eq.s32.totalorder %s1200_s22, 0 }
  0x3d   : > { %p130_p2 = scmp.eq.s32.totalorder %s1368_s27, 3  ;;  %s1712_s26 = smov (%p36_p6, %s1710_s26), 0 }
  0x3e   : > { %p1383_p13 = por %p1673_p11, %p48_p8  ;;  %1675 = sst [smem:[#allocation18_spill]] %s1712_s26 }
  0x3f   : > { %p1393_p1 = por %p55_p9, %p54_p12  ;;  %p1677_p4 = scmp.ne.s32.totalorder %s1164_s13, %s1160_s12 }
  0x40   : > { %s38_s25 = ssub.s32 %s1196_s21, %s1712_s26  ;;  %p1406_p3 = por %p130_p2, %p48_p8 }
  0x41   : > { %s1676_s24 = scalar_select %p1393_p1, 1, 0 }
  0x42   : > { %p1400_p0 = por %p1677_p4, %p55_p9  ;;  %p39_p11 = scmp.eq.s32.totalorder %s38_s25, 0 }
  0x43   : > { %s1679_s4 = scalar_select %p1406_p3, 1, 0 }
  0x44   : > { %s1678_s9 = scalar_select %p1400_p0, 1, 0 }
  0x45   : > { %p136_p10 = scmp.eq.s32.totalorder %s660_s8, 3  ;;  %s156_s5 = sand.u32 1, %s1180_s17  }
  0x46   : > { %s683_s1 = sshll.u32 %s1196_s21, 9  ;;  %s663_s12 = sshll.u32 %s156_s5, 5 }
  0x47   : > { %s1413_s23 = scalar_select %p39_p11, %s1180_s17, %s41_s29  }
  0x48   : > { %p1418_p6 = por %p136_p10, %p54_p12  ;;  %s1425_s26 = scalar_lea.hbm %s1641_s0, %s683_s1 }
  0x49   : > { %1680 = sst [smem:[#allocation19_spill]] %s1413_s23  ;;  %p1682_p8 = scmp.lt.s32.totalorder %s1200_s22, 4 }
  0x4a   : > { %s1681_s28 = scalar_select %p1418_p6, 1, 0 }
  0x4b   : > { %p1431_p9 = pnand %p1682_p8, %p1383_p13  ;;  %s160_s29 = scalar_lea.vmem [#allocation3], %s663_s12 }
  0x4c   : > { %s167_s25 = sshll.u32 %s160_s29, 4  ;;  %s1437_s21 = scalar_lea.sflag [#allocation4], %s156_s5  ;;  %s1435_s25 = int_to_ptr.vmem [resolvable:$true] %s167_s25 }
  0x4d   : > { %s1014_s1 = scalar_lea.hbm %s1425_s26, 512  ;;  %p1016_p12 = pneg %p1431_p9 }
  0x4e   : > { %p1015_p10 = scmp.ne.s32.totalorder %s1425_s26, %s1014_s1  ;;  %s1019_s7 = scalar_lea.hbm %s1641_s0, 1024 }
  0x4f   : > { %p1020_p13 = scmp.lt.u32.totalorder %s1425_s26, %s1641_s0  ;;  %p1021_p11 = scmp.lt.u32.totalorder %s1019_s7, %s1014_s1 }
  0x50   : > { %p1017_p2 = pnand %p1016_p12, %p1015_p10  ;;  %p1023_p6 = scmp.lt.u32.totalorder %s1014_s1, %s1425_s26 }
  0x51   : > { %p1022_p8 = por %p1021_p11, %p1020_p13 }
  0x52   : > { %p1018_p4 = pneg %p1017_p2 }
  0x53   : > { %p1024_p3 = por %p1023_p6, %p1022_p8 }
  0x55   : > { %p1025_p0 = pnand %p1024_p3, %p1018_p4 }
  0x57   : > { %1028 = shalt.err (!%p1025_p0)
}
  0x58   : > { %s1029_s5 = scalar_lea.vmem %s1435_s25, 512  ;;  %s1206_s12 = smov [#allocation3]  }
  0x59   : > { %p1030_p10 = scmp.ne.s32.totalorder %s1435_s25, %s1029_s5  ;;  %s1034_s29 = sshll.u32 %s1206_s12, 4  ;;  %s1035_s29 = int_to_ptr.vmem [resolvable:$false] %s1034_s29 }
  0x5a   : > { %s1036_s17 = scalar_lea.vmem %s1035_s29, 1024  ;;  %p1037_p5 = scmp.lt.s32.totalorder %s1435_s25, %s1035_s29 }
  0x5b   : > { %p1032_p2 = pnand %p1030_p10, %p1016_p12  ;;  %p1038_p13 = scmp.lt.s32.totalorder %s1036_s17, %s1029_s5 }
  0x5d   : > { %p1033_p1 = pneg %p1032_p2  ;;  %p1039_p11 = por %p1038_p13, %p1037_p5 }
  0x5f   : > { %p1040_p6 = pnand %p1039_p11, %p1033_p1 }
  0x61   : > { %1043 = shalt.err (!%p1040_p6)
}
  0x62   : > { %s1684_s23 = smov 8   ;;  %s1685_s1 = smov 128  }
  0x63   : > { %877 = dma.hbm_to_vmem [thread:$0]  (!%p1431_p9), %s1425_s26, 512, %s1435_s25, %s1437_s21, %s1685_s1, %s1685_s1, %s1684_s23  }
  0x64   : > { %s684_s3 = sshll.u32 %s1192_s20, 11  ;;  %s201_s14 = scalar_lea.vmem [#allocation8], %s1312_s30 }
  0x65   : > { %s208_s7 = sshll.u32 %s201_s14, 4  ;;  %s1473_s29 = scalar_lea.hbm %s1643_s2, %s684_s3  ;;  %s1475_s7 = int_to_ptr.vmem [resolvable:$true] %s208_s7 }
  0x66   : > { %s1044_s8 = scalar_lea.hbm %s1473_s29, 2048  ;;  %p1686_p1 = pneg %p1323_p7 }
  0x67   : > { %p1045_p5 = scmp.ne.s32.totalorder %s1473_s29, %s1044_s8  ;;  %s1049_s26 = scalar_lea.hbm %s1643_s2, 4096 }
  0x68   : > { %p1050_p9 = scmp.lt.u32.totalorder %s1473_s29, %s1643_s2  ;;  %p1051_p12 = scmp.lt.u32.totalorder %s1049_s26, %s1044_s8 }
  0x69   : > { %p1047_p0 = pnand %p1045_p5, %p1686_p1  ;;  %p1053_p8 = scmp.lt.u32.totalorder %s1044_s8, %s1473_s29 }
  0x6a   : > { %p1052_p4 = por %p1051_p12, %p1050_p9 }
  0x6b   : > { %p1048_p3 = pneg %p1047_p0 }
  0x6c   : > { %p1054_p10 = por %p1053_p8, %p1052_p4 }
  0x6e   : > { %p1055_p2 = pnand %p1054_p10, %p1048_p3 }
  0x70   : > { %1058 = shalt.err (!%p1055_p2)
}
  0x71   : > { %s1059_s3 = scalar_lea.vmem %s1475_s7, 2048  ;;  %p1687_p11 = pmov %p1686_p1 }
  0x72   : > { %p1060_p13 = scmp.ne.s32.totalorder %s1475_s7, %s1059_s3  ;;  %s1207_s14 = smov [#allocation8]  }
  0x73   : > { %s1064_s12 = sshll.u32 %s1207_s14, 4  ;;  %s1065_s12 = int_to_ptr.vmem [resolvable:$false] %s1064_s12 }
  0x74   : > { %p1062_p6 = pnand %p1060_p13, %p1687_p11  ;;  %s1066_s5 = scalar_lea.vmem %s1065_s12, 4096 }
  0x75   : > { %p1067_p1 = scmp.lt.s32.totalorder %s1475_s7, %s1065_s12  ;;  %p1068_p0 = scmp.lt.s32.totalorder %s1066_s5, %s1059_s3 }
  0x76   : > { %p1063_p5 = pneg %p1062_p6 }
  0x77   : > { %p1069_p9 = por %p1068_p0, %p1067_p1 }
  0x79   : > { %p1070_p12 = pnand %p1069_p9, %p1063_p5 }
  0x7b   : > { %1073 = shalt.err (!%p1070_p12)
}
  0x7c   : > { %883 = dma.hbm_to_vmem [thread:$0]  (!%p1323_p7), %s1473_s29, 2048, %s1475_s7, %s1330_s11, %s1685_s1, %s1685_s1, %s1684_s23  }
  0x7d   : > { %p1688_p3 = scmp.ne.s32.totalorder %s1672_s6, 0 }
  0x7e   : > { %s1507_s8 = sand.u32 (!%p1688_p3), 1, %s1176_s16   ;;  %p1689_p4 = scmp.ne.s32.totalorder (!%p1688_p3), %s1676_s24, 0 }
  0x7f   : > { %220 = sbr.rel (%p1688_p3) target bundleno = 654 (0x28e), region = 32  ;;  %s672_s21 = sshll.u32 (!%p1688_p3), %s1507_s8, 5 }
  0x80   : > { %s223_s30 = scalar_lea.sflag (!%p1688_p3), [#allocation4], %s1507_s8  ;;  %s1511_s26 = scalar_lea.vmem (!%p1688_p3), [#allocation3], %s672_s21 }
  0x86   : > { %1147 = dma.done.wait (%p1689_p4), %s223_s30, 512  }
  0x87   : > { %1149 = vsyncadd (%p1689_p4), %s223_s30, 4294966784  ;;  %s231_s10 = sand.u32 1, %s1368_s27   ;;  %s233_s11 = sand.u32 1, %s1164_s13  }
  0x88   : > { %s673_s6 = sshll.u32 %s233_s11, 7  ;;  %s232_s23 = scalar_lea.sflag [#allocation7], %s231_s10 }
  0x89   : > { %s1519_s1 = scalar_lea.vmem [#allocation6], %s673_s6  ;;  %p1690_p7 = scmp.ne.s32.totalorder %s1678_s9, 0 }
  0x8b   : > { %1151 = dma.done.wait (%p1690_p7), %s232_s23, 4096  }
  0x8c   : > { %1153 = vsyncadd (%p1690_p7), %s232_s23, 4294963200  ;;  %s1525_s7 = scalar_lea.vmem [#allocation8], %s673_s6  ;;  %s1527_s29 = scalar_lea.vmem [#allocation9], %s672_s21 }
  0x8d   : > { %p676_p8 = scmp.ne.s32.totalorder %s1184_s18, 0 }
  0x8e   : > { %v1208_v0 = vmov (!%p676_p8), 0.0  }
  0x8f   : > { %283 = sbr.rel (%p676_p8) target bundleno = 150 (0x96), region = 48  ;;  %284 = vst [vmem:[#allocation2] sm:$0xff] (!%p676_p8), %v1208_v0  ;;  %285 = vst [vmem:[#allocation2 + $0x8] sm:$0xff] (!%p676_p8), %v1208_v0 }
  0x90   : > { %286 = vst [vmem:[#allocation2 + $0x10] sm:$0xff] (!%p676_p8), %v1208_v0  ;;  %287 = vst [vmem:[#allocation2 + $0x18] sm:$0xff] (!%p676_p8), %v1208_v0 }
  0x96 PF: > { %v292_v1 = vld [vmem:[%s1519_s1] sm:$0xff]  ;;  %v293_v2 = vld [vmem:[%s1519_s1 + $0x8] sm:$0xff]  ;;  %v294_v3 = vld [vmem:[%s1519_s1 + $0x10] sm:$0xff]  ;;  %p677_p10 = scmp.ne.s32.totalorder %s1184_s18, 1 }
  0x97   : > { %v802_v4 = vpack.c.bf16 %v293_v2, %v292_v1  ;;  %v295_v5 = vld [vmem:[%s1519_s1 + $0x18] sm:$0xff]  ;;  %v296_v7 = vld [vmem:[%s1519_s1 + $0x20] sm:$0xff]  ;;  %v297_v8 = vld [vmem:[%s1519_s1 + $0x28] sm:$0xff] }
  0x98   : > { %v806_v6 = vpack.c.bf16 %v295_v5, %v294_v3  ;;  %v810_v9 = vpack.c.bf16 %v297_v8, %v296_v7  ;;  %v288_v10 = vld [vmem:[%s1511_s26] sm:$0xff]  ;;  %v298_v11 = vld [vmem:[%s1519_s1 + $0x30] sm:$0xff]  ;;  %v299_v12 = vld [vmem:[%s1519_s1 + $0x38] sm:$0xff] }
  0x99   : > { %803 = vmatprep.subr.bf16.mxu0 %v802_v4  ;;  %758 = vmatprep.mubr.f32.mxu0 %v288_v10  ;;  %v397_v13 = vld [vmem:[%s1525_s7] sm:$0xff]  ;;  %v398_v14 = vld [vmem:[%s1525_s7 + $0x8] sm:$0xff]  ;;  %v399_v15 = vld [vmem:[%s1525_s7 + $0x10] sm:$0xff]  ;;  %v814_v19 = vpack.c.bf16 %v299_v12, %v298_v11 }
  0x9a   : > { %805 = vmatpush3.bf16.msra.mxu0 %v802_v4  ;;  %v400_v16 = vld [vmem:[%s1525_s7 + $0x18] sm:$0xff]  ;;  %v834_v17 = vpack.c.bf16 %v398_v14, %v397_v13  ;;  %v401_v20 = vld [vmem:[%s1525_s7 + $0x20] sm:$0xff]  ;;  %v402_v21 = vld [vmem:[%s1525_s7 + $0x28] sm:$0xff] }
  0x9b   : > { %807 = vmatprep.subr.bf16.mxu0 %v806_v6  ;;  %v838_v18 = vpack.c.bf16 %v400_v16, %v399_v15  ;;  %v300_v22 = vld [vmem:[%s1519_s1 + $0x40] sm:$0xff]  ;;  %v301_v23 = vld [vmem:[%s1519_s1 + $0x48] sm:$0xff]  ;;  %v842_v24 = vpack.c.bf16 %v402_v21, %v401_v20  ;;  %v403_v26 = vld [vmem:[%s1525_s7 + $0x30] sm:$0xff] }
  0x9c   : > { %835 = vmatprep.subr.bf16.mxu1 %v834_v17  ;;  %v818_v25 = vpack.c.bf16 %v301_v23, %v300_v22  ;;  %v404_v27 = vld [vmem:[%s1525_s7 + $0x38] sm:$0xff]  ;;  %v302_v28 = vld [vmem:[%s1519_s1 + $0x50] sm:$0xff]  ;;  %v405_v32 = vld [vmem:[%s1525_s7 + $0x40] sm:$0xff] }
  0x9d   : > { %837 = vmatpush3.bf16.msra.mxu1 %v834_v17  ;;  %v303_v29 = vld [vmem:[%s1519_s1 + $0x58] sm:$0xff]  ;;  %v846_v30 = vpack.c.bf16 %v404_v27, %v403_v26  ;;  %v406_v33 = vld [vmem:[%s1525_s7 + $0x48] sm:$0xff]  ;;  %v304_v34 = vld [vmem:[%s1519_s1 + $0x60] sm:$0xff] }
  0x9e   : > { %809 = vmatpush3.bf16.msra.mxu0 %v806_v6  ;;  %839 = vmatprep.subr.bf16.mxu1 %v838_v18  ;;  %v822_v31 = vpack.c.bf16 %v303_v29, %v302_v28  ;;  %v305_v35 = vld [vmem:[%s1519_s1 + $0x68] sm:$0xff]  ;;  %v850_v36 = vpack.c.bf16 %v406_v33, %v405_v32  ;;  %v407_v38 = vld [vmem:[%s1525_s7 + $0x50] sm:$0xff]  ;;  %v408_v39 = vld [vmem:[%s1525_s7 + $0x58] sm:$0xff] }
  0x9f   : > { %811 = vmatprep.subr.bf16.mxu0 %v810_v9  ;;  %v826_v37 = vpack.c.bf16 %v305_v35, %v304_v34  ;;  %v306_v40 = vld [vmem:[%s1519_s1 + $0x70] sm:$0xff]  ;;  %v307_v41 = vld [vmem:[%s1519_s1 + $0x78] sm:$0xff]  ;;  %v854_v42 = vpack.c.bf16 %v408_v39, %v407_v38  ;;  %v409_v44 = vld [vmem:[%s1525_s7 + $0x60] sm:$0xff] }
  0xa0   : > { %v830_v43 = vpack.c.bf16 %v307_v41, %v306_v40  ;;  %v410_v45 = vld [vmem:[%s1525_s7 + $0x68] sm:$0xff]  ;;  %v411_v47 = vld [vmem:[%s1525_s7 + $0x70] sm:$0xff]  ;;  %v412_v48 = vld [vmem:[%s1525_s7 + $0x78] sm:$0xff] }
  0xa1   : > { %841 = vmatpush3.bf16.msra.mxu1 %v838_v18  ;;  %v858_v46 = vpack.c.bf16 %v410_v45, %v409_v44  ;;  %v289_v49 = vld [vmem:[%s1511_s26 + $0x8] sm:$0xff]  ;;  %v862_v50 = vpack.c.bf16 %v412_v48, %v411_v47  ;;  %v290_v51 = vld [vmem:[%s1511_s26 + $0x10] sm:$0xff]  ;;  %v291_v52 = vld [vmem:[%s1511_s26 + $0x18] sm:$0xff] }
  0xa2   : > { %813 = vmatpush3.bf16.msra.mxu0 %v810_v9  ;;  %843 = vmatprep.subr.bf16.mxu1 %v842_v24  ;;  %v394_v57 = vld [vmem:[#allocation2 + $0x8] sm:$0xff]  ;;  %v393_v58 = vld [vmem:[#allocation2] sm:$0xff]  ;;  %v396_v63 = vld [vmem:[#allocation2 + $0x18] sm:$0xff] }
  0xa3   : > { %815 = vmatprep.subr.bf16.mxu0 %v814_v19  ;;  %v395_v0 = vld [vmem:[#allocation2 + $0x10] sm:$0xff] }
  0xa5   : > { %845 = vmatpush3.bf16.msra.mxu1 %v842_v24 }
  0xa6   : > { %817 = vmatpush3.bf16.msra.mxu0 %v814_v19  ;;  %847 = vmatprep.subr.bf16.mxu1 %v846_v30 }
  0xa7   : > { %819 = vmatprep.subr.bf16.mxu0 %v818_v25 }
  0xa9   : > { %849 = vmatpush3.bf16.msra.mxu1 %v846_v30 }
  0xaa   : > { %821 = vmatpush3.bf16.msra.mxu0 %v818_v25  ;;  %851 = vmatprep.subr.bf16.mxu1 %v850_v36 }
  0xab   : > { %823 = vmatprep.subr.bf16.mxu0 %v822_v31 }
  0xad   : > { %853 = vmatpush3.bf16.msra.mxu1 %v850_v36 }
  0xae   : > { %825 = vmatpush3.bf16.msra.mxu0 %v822_v31  ;;  %855 = vmatprep.subr.bf16.mxu1 %v854_v42 }
  0xaf   : > { %827 = vmatprep.subr.bf16.mxu0 %v826_v37 }
  0xb1   : > { %857 = vmatpush3.bf16.msra.mxu1 %v854_v42 }
  0xb2   : > { %829 = vmatpush3.bf16.msra.mxu0 %v826_v37  ;;  %859 = vmatprep.subr.bf16.mxu1 %v858_v46 }
  0xb3   : > { %831 = vmatprep.subr.bf16.mxu0 %v830_v43 }
  0xb5   : > { %861 = vmatpush3.bf16.msra.mxu1 %v858_v46 }
  0xb6   : > { %833 = vmatpush3.bf16.msra.mxu0 %v830_v43  ;;  %863 = vmatprep.subr.bf16.mxu1 %v862_v50 }
  0xb9   : > { %759 = vmatmul.mubr.f32.vlgmr.msra.gmra.mrb[0].mxu0 %v289_v49  ;;  %865 = vmatpush3.bf16.msra.mxu1 %v862_v50 }
  0xba   : > { %761 = vmatprep.mubr.f32.mxu0 %v290_v51 }
  0xbd   : > { %762 = vmatmul.mubr.f32.gmra.mrb[2].mxu0 %v291_v52 }
 0x18c   : > { %v760_v53 = vpop.f32.mrb[0].mxu0 }
 0x18d   : > { %v374_v54 = vpop.f32.mrb[1].mxu0 }
 0x18e   : > { %796 = vmatprep.mubr.f32.mxu1 %v374_v54 }
 0x18f   : > { %797 = vmatmul.mubr.f32.vlgmr.msra.gmra.mrb[0].mxu1 %v760_v53 }
 0x190   : > { %v763_v55 = vpop.f32.mrb[2].mxu0 }
 0x191   : > { %v384_v56 = vpop.f32.mrb[3].mxu0 }
 0x192   : > { %799 = vmatprep.mubr.f32.mxu1 %v384_v56 }
 0x193   : > { %800 = vmatmul.mubr.f32.gmra.mrb[2].mxu1 %v763_v55 }
 0x262   : > { %v798_v59 = vpop.f32.mrb[0].mxu1 }
 0x263   : > { %v499_v60 = vadd.f32 %v798_v59, %v394_v57  ;;  %v479_v61 = vpop.f32.mrb[1].mxu1 }
 0x264   : > { %v498_v62 = vadd.f32 %v479_v61, %v393_v58  ;;  %509 = sbr.rel (%p677_p10) target bundleno = 627 (0x273), region = 52 }
 0x265   : > { %503 = vst [vmem:[#allocation2 + $0x8] sm:$0xff] %v499_v60 }
 0x266   : > { %502 = vst [vmem:[#allocation2] sm:$0xff] %v498_v62  ;;  %v801_v1 = vpop.f32.mrb[2].mxu1 }
 0x267   : > { %v501_v2 = vadd.f32 %v801_v1, %v396_v63  ;;  %v489_v3 = vpop.f32.mrb[3].mxu1 }
 0x268   : > { %v500_v4 = vadd.f32 %v489_v3, %v395_v0 }
 0x269   : > { %505 = vst [vmem:[#allocation2 + $0x18] sm:$0xff] %v501_v2 }
 0x26a   : > { %504 = vst [vmem:[#allocation2 + $0x10] sm:$0xff] %v500_v4 }
 0x26c   : > { %v511_v6 = vld [vmem:[#allocation2 + $0x8] sm:$0xff] }
 0x26d   : > { %v510_v5 = vld [vmem:[#allocation2] sm:$0xff]  ;;  %515 = vst [vmem:[%s1527_s29 + $0x8] sm:$0xff] %v511_v6 }
 0x26e   : > { %514 = vst [vmem:[%s1527_s29] sm:$0xff] %v510_v5 }
 0x270   : > { %v513_v8 = vld [vmem:[#allocation2 + $0x18] sm:$0xff] }
 0x271   : > { %v512_v7 = vld [vmem:[#allocation2 + $0x10] sm:$0xff]  ;;  %517 = vst [vmem:[%s1527_s29 + $0x18] sm:$0xff] %v513_v8 }
 0x272   : > { %516 = vst [vmem:[%s1527_s29 + $0x10] sm:$0xff] %v512_v7 }
 0x273 PF: > { %s685_s27 = sshll.u32 %s1188_s19, 9  ;;  %s1691_s9 = sld [smem:[#allocation21_spill]] }
 0x274   : > { %s532_s17 = sshll.u32 %s1527_s29, 4  ;;  %s519_s3 = scalar_lea.sflag [#allocation5], %s1507_s8  ;;  %s1578_s17 = int_to_ptr.vmem [resolvable:$true] %s532_s17 }
 0x275   : > { %s1074_s14 = scalar_lea.vmem %s1578_s17, 512  ;;  %p1692_p13 = scmp.ne.s32.totalorder %s1679_s4, 0 }
 0x276   : > { %p1075_p2 = scmp.ne.s32.totalorder %s1578_s17, %s1074_s14  ;;  %s1209_s12 = smov [#allocation9]  }
 0x277   : > { %s1078_s5 = sshll.u32 %s1209_s12, 4  ;;  %s1079_s5 = int_to_ptr.vmem [resolvable:$false] %s1078_s5 }
 0x278   : > { %p1076_p11 = pnand %p1075_p2, %p1692_p13  ;;  %s1080_s19 = scalar_lea.vmem %s1079_s5, 1024 }
 0x279   : > { %s1575_s25 = scalar_lea.hbm %s1691_s9, %s685_s27  ;;  %p1081_p5 = scmp.lt.s32.totalorder %s1578_s17, %s1079_s5 }
 0x27a   : > { %p1077_p6 = pneg %p1076_p11  ;;  %p1082_p1 = scmp.lt.s32.totalorder %s1080_s19, %s1074_s14 }
 0x27c   : > { %p1083_p0 = por %p1082_p1, %p1081_p5 }
 0x27e   : > { %p1084_p9 = pnand %p1083_p0, %p1077_p6 }
 0x280   : > { %1087 = shalt.err (!%p1084_p9)
}
 0x281   : > { %s1088_s21 = scalar_lea.hbm %s1575_s25, 512  ;;  %s1092_s10 = scalar_lea.hbm %s1691_s9, 1024 }
 0x282   : > { %p1089_p12 = scmp.ne.s32.totalorder %s1575_s25, %s1088_s21  ;;  %p1093_p7 = scmp.lt.u32.totalorder %s1575_s25, %s1691_s9 }
 0x283   : > { %p1094_p8 = scmp.lt.u32.totalorder %s1092_s10, %s1088_s21  ;;  %p1096_p2 = scmp.lt.u32.totalorder %s1088_s21, %s1575_s25 }
 0x284   : > { %p1090_p3 = pnand %p1089_p12, %p1692_p13 }
 0x285   : > { %p1095_p10 = por %p1094_p8, %p1093_p7 }
 0x286   : > { %p1091_p4 = pneg %p1090_p3 }
 0x287   : > { %p1097_p11 = por %p1096_p2, %p1095_p10 }
 0x289   : > { %p1098_p6 = pnand %p1097_p11, %p1091_p4 }
 0x28b   : > { %1101 = shalt.err (!%p1098_p6)
}
 0x28c   : > { %s1210_s23 = smov 128   ;;  %s1211_s1 = smov 8  }
 0x28d   : > { %872 = dma.vmem_to_hbm [thread:$0]  (%p1692_p13), %s1578_s17, 512, %s1575_s25, %s519_s3, %s1210_s23, %s1210_s23, %s1211_s1  }
 0x28e PF: > { %p889_p5 = scmp.ge.s32.totalorder %s1200_s22, 2  ;;  %s547_s7 = sand.u32 1, %s1172_s15  }
 0x28f   : > { %p1693_p1 = scmp.ne.s32.totalorder %s1681_s28, 0  ;;  %s548_s29 = scalar_lea.sflag [#allocation5], %s547_s7 }
 0x291   : > { %p885_p0 = pnand %p889_p5, %p1693_p1 }
 0x293   : > { %1155 = dma.done.wait (!%p885_p0), %s548_s29, 512  }
 0x294   : > { %1157 = vsyncadd (!%p885_p0), %s548_s29, 4294966784  ;;  %s22_s22 = sadd.s32 1, %s1200_s22   ;;  %s1694_s27 = sld [smem:[#allocation13_spill]] }
 0x295   : > { %p19_p9 = scmp.ge.s32.totalorder %s22_s22, 6   ;;  %s1695_s14 = sld [smem:[#allocation17_spill]] }
 0x296   : > { %s1696_s4 = sld [smem:[#allocation14_spill]]  ;;  %s1697_s17 = sld [smem:[#allocation19_spill]] }
 0x297   : > { %s1698_s19 = sld [smem:[#allocation15_spill]]  ;;  %s1699_s8 = sld [smem:[#allocation16_spill]] }
 0x298   : > { %s1700_s21 = sld [smem:[#allocation18_spill]]  ;;  %s1701_s12 = smov %s1164_s13 }
 0x299   : > { %s1703_s15 = smov %s1176_s16  ;;  %s1705_s18 = smov %s1192_s20 }
 0x29a   : > { %s1702_s13 = smov %s1694_s27  ;;  %21 = sbr.rel (!%p19_p9) target bundleno = 14 (0xe), region = 109 }
 0x29c   : > { %s1704_s16 = smov %s1696_s4 }
 0x29d   : > { %s1706_s20 = smov %s1699_s8 }
 0x2a1   :  { %553 = vsyncpa [#allocation4], 1 }
 0x2a2   :  { %555 = vsyncpa [#allocation4 + $0x1], 1 }
 0x2a3   :  { %556 = vsyncpa [#allocation7], 1 }
 0x2a4   :  { %558 = vsyncpa [#allocation7 + $0x1], 1 }
 0x2a5   :  { %559 = vsyncpa [#allocation5], 1 }
 0x2a6   :  { %561 = vsyncpa [#allocation5 + $0x1], 1 }

</bundles_post_ra>
